<compile_context>
chip_gen: v5e
topology: v5e:2x2
jax: 0.10.0
libtpu: 0.0.40
codegen_flags: <defaults>
</compile_context>

<pallas_src>
import jax
import jax.numpy as jnp
from jax.experimental import pallas as pl
from jax.experimental.pallas import tpu as pltpu

_LANES = 128
_SUBLANES = 8


def _round_up(x, m):
    return (x + m - 1) // m * m


def _pointwise_conv_kernel(x_ref, w_ref, b_ref, o_ref):
    # x_ref: (tm, K), w_ref: (K, N), b_ref: (1, N) f32, o_ref: (tm, N)
    acc = jnp.dot(x_ref[...], w_ref[...], preferred_element_type=jnp.float32)
    o_ref[...] = (acc + b_ref[...]).astype(o_ref.dtype)   # fused f32 add + cast


def _vmem_capacity_bytes():
    try:
        return int(pltpu.get_tpu_info().vmem_capacity_bytes)
    except Exception:
        return 64 * 1024 * 1024      # conservative fallback (v7x per-TC VMEM)


def _choose_tile_and_vmem_limit(M, K, N, in_dtype, out_dtype):
    """Row-tile size + explicit scoped-VMEM limit from an honest footprint."""
    cap = _vmem_capacity_bytes()
    budget = min(20 * 1024 * 1024, cap // 3)
    in_b = jnp.dtype(in_dtype).itemsize
    out_b = jnp.dtype(out_dtype).itemsize
    kv = _round_up(K, _LANES)            # lane-padded widths as held in VMEM
    nv = _round_up(N, _LANES)
    # Per row: double-buffered input + double-buffered output + the f32
    # accumulator temp produced by the dot before the final cast.
    per_row = 2 * kv * in_b + 2 * nv * out_b + nv * 4
    # Resident weight + bias (counted double-buffered to be safe).
    fixed = 2 * _round_up(K, _SUBLANES) * nv * in_b + 2 * _SUBLANES * nv * 4
    tm_max = max(_SUBLANES, (budget - fixed) // per_row)
    # Balance the grid over an even number (>=2) of steps so both v7x
    # TensorCores get work and the last block is never a sliver.
    n_steps = max(2, pl.cdiv(M, tm_max))
    if n_steps % 2:
        n_steps += 1
    tm = _round_up(pl.cdiv(M, n_steps), 16)
    tm = min(tm, M)                      # never larger than the array itself
    est = fixed + tm * per_row
    vmem_limit = int(max(32 * 1024 * 1024,
                         min(cap // 2, (3 * est) // 2 + (4 << 20))))
    return tm, vmem_limit


def _tiled_rowwise_linear(x2d, w2d, b_f32):
    """out[m, n] = sum_k x2d[m, k] * w2d[k, n] + b_f32[n], row-tiled."""
    M, K = x2d.shape
    N = w2d.shape[1]
    b2d = b_f32.reshape(1, N).astype(jnp.float32)
    tm, vmem_limit = _choose_tile_and_vmem_limit(M, K, N, x2d.dtype, x2d.dtype)
    grid = (pl.cdiv(M, tm),)
    return pl.pallas_call(
        _pointwise_conv_kernel,
        out_shape=jax.ShapeDtypeStruct((M, N), x2d.dtype),
        grid_spec=pltpu.PrefetchScalarGridSpec(
            num_scalar_prefetch=0,
            grid=grid,
            in_specs=[
                pl.BlockSpec((tm, K), lambda i: (i, 0)),
                pl.BlockSpec((K, N), lambda i: (0, 0)),   # resident weight
                pl.BlockSpec((1, N), lambda i: (0, 0)),   # resident f32 bias
            ],
            out_specs=pl.BlockSpec((tm, N), lambda i: (i, 0)),
        ),
        compiler_params=pltpu.CompilerParams(
            dimension_semantics=("parallel",),
            vmem_limit_bytes=vmem_limit),
    )(x2d, w2d, b2d)


def _same_size_conv2d_impl(x_nhwc, weight, bias):
    """1x1 conv on NHWC input. weight: (Cout, Cin); bias: (Cout,)."""
    B, H, W, Cin = x_nhwc.shape
    Cout = weight.shape[0]
    M = B * H * W
    dt = x_nhwc.dtype
    wt = weight.T.astype(dt)                       # (Cin, Cout)
    bias_f32 = bias.astype(jnp.float32)

    use_folded = (Cin < _LANES) and (_LANES % Cin == 0)
    if use_folded:
        G = _LANES // Cin
        M_main = (M // G) * G
        use_folded = M_main > 0

    if not use_folded:
        # Generic path (awkward channel counts or M < G).
        # TODO(synk): if this path ever gets hot for large Cin/Cout, add
        # Cout/Cin grid axes with a pl.when-init f32 accumulator (standard
        # tiled-matmul pattern); unnecessary for the small-channel module.
        out2d = _tiled_rowwise_linear(x_nhwc.reshape(M, Cin), wt, bias_f32)
        return out2d.reshape(B, H, W, Cout)

    # Lane-dense folded path.
    N = G * Cout
    idx = jnp.arange(G)
    big_w = (jnp.zeros((G, Cin, G, Cout), dtype=dt)
             .at[idx, :, idx, :].set(wt)           # block-diagonal, no kron
             .reshape(G * Cin, N))                 # (128, G*Cout)
    big_b = jnp.tile(bias_f32, G)                  # (G*Cout,) f32

    if M_main == M:
        x_fold = x_nhwc.reshape(M // G, G * Cin)           # free collapse
        out_fold = _tiled_rowwise_linear(x_fold, big_w, big_b)
        return out_fold.reshape(B, H, W, Cout)             # free collapse

    # Ragged M: folded kernel on the first floor(M/G)*G rows (the leading
    # slice costs one extra copy of those rows -- still far cheaper than the
    # lane-sparse generic path) + tiny generic call on the <G leftover rows.
    x_flat = x_nhwc.reshape(M, Cin)
    x_fold = x_flat[:M_main].reshape(M_main // G, G * Cin)
    out_main = _tiled_rowwise_linear(x_fold, big_w, big_b).reshape(M_main, Cout)
    out_tail = _tiled_rowwise_linear(x_flat[M_main:], wt, bias_f32)
    out2d = jnp.concatenate([out_main, out_tail], axis=0)
    return out2d.reshape(B, H, W, Cout)


# jit the whole forward so big_w / tile construction fuse into one program
# instead of standalone dispatches per call.
same_size_conv2d = jax.jit(_same_size_conv2d_impl)


if __name__ == "__main__":
    key = jax.random.PRNGKey(0)
    kx, kw, kb, kx2 = jax.random.split(key, 4)

    B, H, W = 2, 16, 16
    in_channels, out_channels = 4, 8

    # Deterministic params mimicking nn.Conv2d defaults (fan_in = Cin*1*1).
    bound = 1.0 / (in_channels ** 0.5)
    weight = jax.random.uniform(kw, (out_channels, in_channels),
                                minval=-bound, maxval=bound, dtype=jnp.float32)
    bias = jax.random.uniform(kb, (out_channels,),
                              minval=-bound, maxval=bound, dtype=jnp.float32)

    # 1) Main case: M divisible by G (pure folded path, zero extra copies).
    x = jax.random.normal(kx, (B, H, W, in_channels), dtype=jnp.float32)
    out = jax.block_until_ready(same_size_conv2d(x, weight, bias))
    ref = jnp.einsum("bhwc,oc->bhwo", x, weight) + bias
    assert out.shape == (B, H, W, out_channels)
    assert jnp.allclose(out, ref, atol=1e-5, rtol=1e-5)

    # 2) Ragged case: M % G != 0 (folded main + tiny generic tail, no fallback
    #    to the lane-sparse path and no whole-array pad).
    x2 = jax.random.normal(kx2, (2, 5, 5, in_channels), dtype=jnp.float32)
    out2 = jax.block_until_ready(same_size_conv2d(x2, weight, bias))
    ref2 = jnp.einsum("bhwc,oc->bhwo", x2, weight) + bias
    assert out2.shape == (2, 5, 5, out_channels)
    assert jnp.allclose(out2, ref2, atol=1e-5, rtol=1e-5)

    print("KERNEL_OK")
</pallas_src>

<mosaic_0001>
module attributes {stable_mosaic.version = 11 : i64} {
  func.func @_pointwise_conv_kernel(%arg0: i32, %arg1: memref<16x128xf32, #tpu.memory_space<vmem>>, %arg2: memref<128x256xf32, #tpu.memory_space<vmem>>, %arg3: memref<1x256xf32, #tpu.memory_space<vmem>>, %arg4: memref<16x256xf32, #tpu.memory_space<vmem>>) attributes {dimension_semantics = [#tpu.dimension_semantics<parallel>], iteration_bounds = array<i64: 1>, scalar_prefetch = 0 : i64, scratch_operands = 0 : i64, tpu.core_type = #tpu.core_type<tc>, window_params = [{transform_indices = @transform_0, window_bounds = array<i64: 16, 128>}, {pipeline_mode = #tpu.pipeline_mode<synchronous>, transform_indices = @transform_1, window_bounds = array<i64: 128, 256>}, {pipeline_mode = #tpu.pipeline_mode<synchronous>, transform_indices = @transform_2, window_bounds = array<i64: 1, 256>}, {transform_indices = @transform_3, window_bounds = array<i64: 16, 256>}]} {
    %c0 = arith.constant 0 : index
    %c0_0 = arith.constant 0 : index
    %0 = vector.load %arg1[%c0, %c0_0] : memref<16x128xf32, #tpu.memory_space<vmem>>, vector<16x128xf32>
    %c0_1 = arith.constant 0 : index
    %c0_2 = arith.constant 0 : index
    %1 = vector.load %arg2[%c0_1, %c0_2] : memref<128x256xf32, #tpu.memory_space<vmem>>, vector<128x256xf32>
    %cst = arith.constant dense<0.000000e+00> : vector<16x256xf32>
    %2 = tpu.matmul %0, %1, %cst {dimension_numbers = #tpu.dot_dimension_numbers<[1], [0], [0], [1], [0, 0, 1, 1], [], []>} : vector<16x128xf32>, vector<128x256xf32>, vector<16x256xf32> -> vector<16x256xf32>
    %c0_3 = arith.constant 0 : index
    %c0_4 = arith.constant 0 : index
    %3 = vector.load %arg3[%c0_3, %c0_4] : memref<1x256xf32, #tpu.memory_space<vmem>>, vector<1x256xf32>
    %4 = vector.broadcast %3 : vector<1x256xf32> to vector<16x256xf32>
    %5 = arith.addf %2, %4 : vector<16x256xf32>
    %c0_5 = arith.constant 0 : index
    %c0_6 = arith.constant 0 : index
    %6 = vector.load %arg4[%c0_5, %c0_6] : memref<16x256xf32, #tpu.memory_space<vmem>>, vector<16x256xf32>
    tpu.vector_store %arg4[%c0_5, %c0_6], %5 {strides = array<i32>} : memref<16x256xf32, #tpu.memory_space<vmem>>, vector<16x256xf32>,
    return
  }
  func.func @transform_0(%arg0: i32) -> (i32, i32) {
    %c0_i32 = arith.constant 0 : i32
    %c0_i32_0 = arith.constant 0 : i32
    return %arg0, %c0_i32 : i32, i32
  }
  func.func @transform_1(%arg0: i32) -> (i32, i32) {
    %c0_i32 = arith.constant 0 : i32
    %c0_i32_0 = arith.constant 0 : i32
    %c0_i32_1 = arith.constant 0 : i32
    return %c0_i32, %c0_i32_0 : i32, i32
  }
  func.func @transform_2(%arg0: i32) -> (i32, i32) {
    %c0_i32 = arith.constant 0 : i32
    %c0_i32_0 = arith.constant 0 : i32
    %c0_i32_1 = arith.constant 0 : i32
    return %c0_i32, %c0_i32_0 : i32, i32
  }
  func.func @transform_3(%arg0: i32) -> (i32, i32) {
    %c0_i32 = arith.constant 0 : i32
    %c0_i32_0 = arith.constant 0 : i32
    return %arg0, %c0_i32 : i32, i32
  }
}

</mosaic_0001>

<bundles_post_ra>
// kernel: tile.8
= control target key start
LH: loop header
LB: loop body
LE: loop exit
PB: predicated region body
PF: predicated region fallthrough
CT: control target
= control target key end

     0   :  { %s40_s0 = inlined_call_operand.vmem [shape: f32[8], index: 0, kind: input, shape index: {}]   ;;  %s41_s1 = inlined_call_operand.vmem [shape: f32[32,8], index: 1, kind: output, shape index: {}]  }
   0x1   :  { %v4_v0 = vld [vmem:[%s40_s0] ss:$0 sm:$0xff] }
   0x2   :  { %5 = vst [vmem:[%s41_s1] sm:$0xff] %v4_v0 }
   0x3   :  { %12 = vst [vmem:[%s41_s1 + $0x8] sm:$0xff] %v4_v0 }
   0x4   :  { %13 = vst [vmem:[%s41_s1 + $0x10] sm:$0xff] %v4_v0 }
   0x5   :  { %14 = vst [vmem:[%s41_s1 + $0x18] sm:$0xff] %v4_v0 }

// kernel: tile.9
= control target key start
LH: loop header
LB: loop body
LE: loop exit
PB: predicated region body
PF: predicated region fallthrough
CT: control target
= control target key end

     0   :  { %s7_s6 = smov 3  ;;  %s21_s9 = smov 3  ;;  %vm4_vm0 = vcmask 64512   ;;  %vm11_vm1 = vcmask 1048512   ;;  %vm18_vm2 = vcmask 982912   ;;  %vm25_vm3 = vcmask 917312   ;;  %s233_s0 = inlined_call_operand.vmem [shape: f32[32,8], index: 0, kind: input, shape index: {}]   ;;  %s234_s1 = inlined_call_operand.vmem [shape: f32[1,256], index: 1, kind: output, shape index: {}]  }
   0x1   :  { %v123_v0 = vld [vmem:[%s233_s0 + $0xf] ss:$16 sm:%s7_s6]   ;;  %s154_s10 = smov 120   ;;  %v125_v1 = vld [vmem:[%s233_s0 + $0xd] ss:$16 sm:%s21_s9]   ;;  %s155_s13 = smov 104  }
   0x2   :  { %9 = vrot.lane.b32.xlu0 %v123_v0, %s154_s10  ;;  %23 = vrot.lane.b32.xlu1 %v125_v1, %s155_s13  ;;  %s14_s14 = smov 3  ;;  %s28_s15 = smov 3  ;;  %vm32_vm4 = vcmask 851712   ;;  %vm39_vm5 = vcmask 786112   ;;  %vm46_vm6 = vcmask 720512   ;;  %vm53_vm7 = vcmask 654912  }
   0x3   :  { %v124_v2 = vld [vmem:[%s233_s0 + $0xe] ss:$16 sm:%s14_s14]   ;;  %v126_v3 = vld [vmem:[%s233_s0 + $0xc] ss:$16 sm:%s28_s15]   ;;  %s35_s20 = smov 3  ;;  %s156_s23 = smov 112  }
   0x4   :  { %v127_v4 = vld [vmem:[%s233_s0 + $0xb] ss:$16 sm:%s35_s20]   ;;  %s157_s24 = smov 88   ;;  %s158_s25 = smov 96   ;;  %vm60_vm8 = vcmask 589312   ;;  %vm67_vm9 = vcmask 523712  }
   0x5   :  { %37 = vrot.lane.b32.xlu2 %v127_v4, %s157_s24  ;;  %s49_s26 = smov 3  ;;  %s42_s27 = smov 3  ;;  %vm74_vm10 = vcmask 458112   ;;  %vm81_vm11 = vcmask 392512   ;;  %vm88_vm12 = vcmask 326912   ;;  %vm95_vm13 = vcmask 261312  }
   0x6   :  { %s56_s28 = smov 3  ;;  %v129_v5 = vld [vmem:[%s233_s0 + $0x9] ss:$16 sm:%s49_s26]   ;;  %v128_v6 = vld [vmem:[%s233_s0 + $0xa] ss:$16 sm:%s42_s27]   ;;  %s159_s6 = smov 72  }
   0x7   :  { %v130_v7 = vld [vmem:[%s233_s0 + $0x8] ss:$16 sm:%s56_s28]   ;;  %s160_s7 = smov 80   ;;  %s161_s8 = smov 64   ;;  %vm102_vm14 = vcmask 195712   ;;  %vm109_vm15 = vcmask 130112  }
   0x8   :  { %s70_s9 = smov 3  ;;  %s63_s10 = smov 3 }
   0x9   :  { %s77_s11 = smov 3  ;;  %v132_v8 = vld [vmem:[%s233_s0 + $0x6] ss:$16 sm:%s70_s9]   ;;  %v131_v9 = vld [vmem:[%s233_s0 + $0x7] ss:$16 sm:%s63_s10]   ;;  %s162_s18 = smov 48  }
   0xa   :  { %16 = vrot.lane.b32.xlu0 %v124_v2, %s156_s23  ;;  %30 = vrot.lane.b32.xlu1 %v126_v3, %s158_s25  ;;  %v133_v10 = vld [vmem:[%s233_s0 + $0x5] ss:$16 sm:%s77_s11]   ;;  %s163_s19 = smov 56   ;;  %s164_s20 = smov 40  }
   0xb   :  { %s91_s21 = smov 3  ;;  %s84_s22 = smov 3 }
   0xc   :  { %s98_s23 = smov 3  ;;  %v135_v11 = vld [vmem:[%s233_s0 + $0x3] ss:$16 sm:%s91_s21]   ;;  %v134_v12 = vld [vmem:[%s233_s0 + $0x4] ss:$16 sm:%s84_s22]   ;;  %s165_s30 = smov 24  }
   0xd   :  { %44 = vrot.lane.b32.xlu2 %v128_v6, %s160_s7  ;;  %v136_v13 = vld [vmem:[%s233_s0 + $0x2] ss:$16 sm:%s98_s23]   ;;  %s166_s2 = smov 32   ;;  %s167_s3 = smov 16  }
   0xe   :  { %s105_s4 = smov 3  ;;  %s168_s7 = smov 8  }
   0xf   :  { %v137_v14 = vld [vmem:[%s233_s0 + $0x1] ss:$16 sm:%s105_s4]  }
  0x12   :  { %51 = vrot.lane.b32.xlu0 %v129_v5, %s159_s6  ;;  %58 = vrot.lane.b32.xlu1 %v130_v7, %s161_s8  ;;  %s2_s8 = smov 3 }
  0x13   :  { %v3_v15 = vld [vmem:[%s233_s0] ss:$16 sm:%s2_s8]  }
  0x14   :  { %5 = vst.msk [vmem:[#allocation0] ss:$8 sm:$0x3] %vm4_vm0, %v3_v15  }
  0x15   :  { %65 = vrot.lane.b32.xlu2 %v131_v9, %s163_s19 }
  0x1a   :  { %72 = vrot.lane.b32.xlu0 %v132_v8, %s162_s18  ;;  %79 = vrot.lane.b32.xlu1 %v133_v10, %s164_s20 }
  0x1d   :  { %86 = vrot.lane.b32.xlu2 %v134_v12, %s166_s2 }
  0x22   :  { %93 = vrot.lane.b32.xlu0 %v135_v11, %s165_s30  ;;  %100 = vrot.lane.b32.xlu1 %v136_v13, %s167_s3 }
  0x25   :  { %107 = vrot.lane.b32.xlu2 %v137_v14, %s168_s7 }
  0x5f   :  { %v38_v16 = vpop.permute.xlu2 %37  }
  0x67   :  { %v45_v17 = vpop.permute.xlu2 %44  }
  0x6f   :  { %v66_v19 = vpop.permute.xlu2 %65  }
  0x74   :  { %v10_v18 = vpop.permute.xlu0 %9   ;;  %v24_v20 = vpop.permute.xlu1 %23  }
  0x75   :  { %12 = vst.msk [vmem:[#allocation0] ss:$8 sm:$0x3] %vm11_vm1, %v10_v18  }
  0x77   :  { %v87_v22 = vpop.permute.xlu2 %86  }
  0x7c   :  { %v17_v21 = vpop.permute.xlu0 %16   ;;  %v31_v23 = vpop.permute.xlu1 %30  }
  0x7d   :  { %19 = vst.msk [vmem:[#allocation0] ss:$8 sm:$0x3] %vm18_vm2, %v17_v21  }
  0x7e   :  { %26 = vst.msk [vmem:[#allocation0] ss:$8 sm:$0x3] %vm25_vm3, %v24_v20  }
  0x7f   :  { %33 = vst.msk [vmem:[#allocation0] ss:$8 sm:$0x3] %vm32_vm4, %v31_v23   ;;  %v108_v25 = vpop.permute.xlu2 %107  }
  0x80   :  { %40 = vst.msk [vmem:[#allocation0] ss:$8 sm:$0x3] %vm39_vm5, %v38_v16  }
  0x81   :  { %47 = vst.msk [vmem:[#allocation0] ss:$8 sm:$0x3] %vm46_vm6, %v45_v17  }
  0x84   :  { %v52_v24 = vpop.permute.xlu0 %51   ;;  %v59_v26 = vpop.permute.xlu1 %58  }
  0x85   :  { %54 = vst.msk [vmem:[#allocation0] ss:$8 sm:$0x3] %vm53_vm7, %v52_v24  }
  0x86   :  { %61 = vst.msk [vmem:[#allocation0] ss:$8 sm:$0x3] %vm60_vm8, %v59_v26  }
  0x87   :  { %68 = vst.msk [vmem:[#allocation0] ss:$8 sm:$0x3] %vm67_vm9, %v66_v19  }
  0x8c   :  { %v73_v27 = vpop.permute.xlu0 %72   ;;  %v80_v28 = vpop.permute.xlu1 %79  }
  0x8d   :  { %75 = vst.msk [vmem:[#allocation0] ss:$8 sm:$0x3] %vm74_vm10, %v73_v27  }
  0x8e   :  { %82 = vst.msk [vmem:[#allocation0] ss:$8 sm:$0x3] %vm81_vm11, %v80_v28  }
  0x8f   :  { %89 = vst.msk [vmem:[#allocation0] ss:$8 sm:$0x3] %vm88_vm12, %v87_v22  }
  0x94   :  { %v94_v29 = vpop.permute.xlu0 %93   ;;  %v101_v30 = vpop.permute.xlu1 %100  }
  0x95   :  { %96 = vst.msk [vmem:[#allocation0] ss:$8 sm:$0x3] %vm95_vm13, %v94_v29  }
  0x96   :  { %103 = vst.msk [vmem:[#allocation0] ss:$8 sm:$0x3] %vm102_vm14, %v101_v30  }
  0x97   :  { %110 = vst.msk [vmem:[#allocation0] ss:$8 sm:$0x3] %vm109_vm15, %v108_v25  }
  0x9e   :  { %v113_v31 = vld [vmem:[#allocation0] sm:$0x1]  ;;  %v118_v32 = vld [vmem:[#allocation0 + $0x8] sm:$0x1] }
  0x9f   :  { %116 = vst [vmem:[%s234_s1] sm:$0x1] %v113_v31 }
  0xa0   :  { %138 = vst [vmem:[%s234_s1 + $0x1] sm:$0x1] %v118_v32 }

// kernel: _same_size_conv2d_impl.1
= control target key start
LH: loop header
LB: loop body
LE: loop exit
PB: predicated region body
PF: predicated region fallthrough
CT: control target
= control target key end

     0   :  { %s277_s1 = inlined_call_operand.vmem [shape: f32[128,256], index: 1, kind: input, shape index: {}]   ;;  %s278_s0 = inlined_call_operand.vmem [shape: f32[16,128], index: 0, kind: input, shape index: {}]   ;;  %s279_s2 = inlined_call_operand.vmem [shape: f32[1,256], index: 2, kind: input, shape index: {}]   ;;  %s280_s3 = inlined_call_operand.vmem [shape: f32[16,256], index: 3, kind: output, shape index: {}]  }
   0x1   :  { %v46_v0 = vld [vmem:[%s277_s1 + $0xf0] sm:$0xff]  ;;  %v47_v1 = vld [vmem:[%s277_s1 + $0xf8] sm:$0xff]  ;;  %v44_v2 = vld [vmem:[%s277_s1 + $0xe0] sm:$0xff] }
   0x2   :  { %108 = vmatpush.msra.mxu2 %v46_v0  ;;  %124 = vmatpush.msra.mxu3 %v47_v1  ;;  %v45_v3 = vld [vmem:[%s277_s1 + $0xe8] sm:$0xff]  ;;  %v42_v4 = vld [vmem:[%s277_s1 + $0xd0] sm:$0xff]  ;;  %v43_v5 = vld [vmem:[%s277_s1 + $0xd8] sm:$0xff] }
   0x3   :  { %54 = vmatpush.msra.mxu0 %v46_v0  ;;  %77 = vmatpush.msra.mxu1 %v47_v1  ;;  %v40_v6 = vld [vmem:[%s277_s1 + $0xc0] sm:$0xff]  ;;  %v41_v7 = vld [vmem:[%s277_s1 + $0xc8] sm:$0xff]  ;;  %v38_v8 = vld [vmem:[%s277_s1 + $0xb0] sm:$0xff] }
   0x4   :  { %109 = vmatpush.msra.mxu2 %v44_v2  ;;  %125 = vmatpush.msra.mxu3 %v45_v3  ;;  %v39_v9 = vld [vmem:[%s277_s1 + $0xb8] sm:$0xff]  ;;  %v36_v10 = vld [vmem:[%s277_s1 + $0xa0] sm:$0xff]  ;;  %v37_v11 = vld [vmem:[%s277_s1 + $0xa8] sm:$0xff] }
   0x5   :  { %55 = vmatpush.msra.mxu0 %v44_v2  ;;  %78 = vmatpush.msra.mxu1 %v45_v3  ;;  %v34_v12 = vld [vmem:[%s277_s1 + $0x90] sm:$0xff]  ;;  %v35_v13 = vld [vmem:[%s277_s1 + $0x98] sm:$0xff]  ;;  %v32_v14 = vld [vmem:[%s277_s1 + $0x80] sm:$0xff] }
   0x6   :  { %110 = vmatpush.msra.mxu2 %v42_v4  ;;  %126 = vmatpush.msra.mxu3 %v43_v5  ;;  %v33_v15 = vld [vmem:[%s277_s1 + $0x88] sm:$0xff]  ;;  %v30_v16 = vld [vmem:[%s277_s1 + $0x70] sm:$0xff]  ;;  %v31_v17 = vld [vmem:[%s277_s1 + $0x78] sm:$0xff] }
   0x7   :  { %56 = vmatpush.msra.mxu0 %v42_v4  ;;  %79 = vmatpush.msra.mxu1 %v43_v5  ;;  %v28_v18 = vld [vmem:[%s277_s1 + $0x60] sm:$0xff]  ;;  %v29_v19 = vld [vmem:[%s277_s1 + $0x68] sm:$0xff]  ;;  %v26_v20 = vld [vmem:[%s277_s1 + $0x50] sm:$0xff] }
   0x8   :  { %111 = vmatpush.msra.mxu2 %v40_v6  ;;  %127 = vmatpush.msra.mxu3 %v41_v7  ;;  %v27_v21 = vld [vmem:[%s277_s1 + $0x58] sm:$0xff]  ;;  %v24_v22 = vld [vmem:[%s277_s1 + $0x40] sm:$0xff]  ;;  %v25_v23 = vld [vmem:[%s277_s1 + $0x48] sm:$0xff] }
   0x9   :  { %57 = vmatpush.msra.mxu0 %v40_v6  ;;  %80 = vmatpush.msra.mxu1 %v41_v7  ;;  %v22_v24 = vld [vmem:[%s277_s1 + $0x30] sm:$0xff]  ;;  %v23_v25 = vld [vmem:[%s277_s1 + $0x38] sm:$0xff]  ;;  %v20_v26 = vld [vmem:[%s277_s1 + $0x20] sm:$0xff] }
   0xa   :  { %112 = vmatpush.msra.mxu2 %v38_v8  ;;  %128 = vmatpush.msra.mxu3 %v39_v9  ;;  %v21_v27 = vld [vmem:[%s277_s1 + $0x28] sm:$0xff]  ;;  %v18_v28 = vld [vmem:[%s277_s1 + $0x10] sm:$0xff]  ;;  %v19_v29 = vld [vmem:[%s277_s1 + $0x18] sm:$0xff] }
   0xb   :  { %58 = vmatpush.msra.mxu0 %v38_v8  ;;  %81 = vmatpush.msra.mxu1 %v39_v9  ;;  %v16_v30 = vld [vmem:[%s277_s1] sm:$0xff]  ;;  %v17_v31 = vld [vmem:[%s277_s1 + $0x8] sm:$0xff] }
   0xc   :  { %113 = vmatpush.msra.mxu2 %v36_v10  ;;  %129 = vmatpush.msra.mxu3 %v37_v11  ;;  %v15_v32 = vld [vmem:[%s278_s0 + $0x8] sm:$0xff]  ;;  %v14_v33 = vld [vmem:[%s278_s0] sm:$0xff] }
   0xd   :  { %59 = vmatpush.msra.mxu0 %v36_v10  ;;  %82 = vmatpush.msra.mxu1 %v37_v11  ;;  %v48_v34 = vld [vmem:[%s279_s2] sm:$0x3] }
   0xe   :  { %114 = vmatpush.msra.mxu2 %v34_v12  ;;  %130 = vmatpush.msra.mxu3 %v35_v13  ;;  %v50_v35 = vperm.slane %v48_v34, 0  ;;  %v51_v36 = vperm.slane %v48_v34, 1 }
   0xf   :  { %60 = vmatpush.msra.mxu0 %v34_v12  ;;  %83 = vmatpush.msra.mxu1 %v35_v13 }
  0x10   :  { %115 = vmatpush.msra.mxu2 %v32_v14  ;;  %131 = vmatpush.msra.mxu3 %v33_v15 }
  0x11   :  { %61 = vmatpush.msra.mxu0 %v32_v14  ;;  %84 = vmatpush.msra.mxu1 %v33_v15 }
  0x12   :  { %116 = vmatpush.msra.mxu2 %v30_v16  ;;  %132 = vmatpush.msra.mxu3 %v31_v17 }
  0x13   :  { %62 = vmatpush.msra.mxu0 %v30_v16  ;;  %85 = vmatpush.msra.mxu1 %v31_v17 }
  0x14   :  { %117 = vmatpush.msra.mxu2 %v28_v18  ;;  %133 = vmatpush.msra.mxu3 %v29_v19 }
  0x15   :  { %63 = vmatpush.msra.mxu0 %v28_v18  ;;  %86 = vmatpush.msra.mxu1 %v29_v19 }
  0x16   :  { %118 = vmatpush.msra.mxu2 %v26_v20  ;;  %134 = vmatpush.msra.mxu3 %v27_v21 }
  0x17   :  { %64 = vmatpush.msra.mxu0 %v26_v20  ;;  %87 = vmatpush.msra.mxu1 %v27_v21 }
  0x18   :  { %119 = vmatpush.msra.mxu2 %v24_v22  ;;  %135 = vmatpush.msra.mxu3 %v25_v23 }
  0x19   :  { %65 = vmatpush.msra.mxu0 %v24_v22  ;;  %88 = vmatpush.msra.mxu1 %v25_v23 }
  0x1a   :  { %120 = vmatpush.msra.mxu2 %v22_v24  ;;  %136 = vmatpush.msra.mxu3 %v23_v25 }
  0x1b   :  { %66 = vmatpush.msra.mxu0 %v22_v24  ;;  %89 = vmatpush.msra.mxu1 %v23_v25 }
  0x1c   :  { %121 = vmatpush.msra.mxu2 %v20_v26  ;;  %137 = vmatpush.msra.mxu3 %v21_v27 }
  0x1d   :  { %67 = vmatpush.msra.mxu0 %v20_v26  ;;  %90 = vmatpush.msra.mxu1 %v21_v27 }
  0x1e   :  { %122 = vmatpush.msra.mxu2 %v18_v28  ;;  %138 = vmatpush.msra.mxu3 %v19_v29 }
  0x1f   :  { %68 = vmatpush.msra.mxu0 %v18_v28  ;;  %91 = vmatpush.msra.mxu1 %v19_v29 }
  0x20   :  { %123 = vmatpush.msra.mxu2 %v16_v30  ;;  %139 = vmatpush.msra.mxu3 %v17_v31 }
  0x21   :  { %73 = vmatmul.f32.vlgmr.msra.gmra.mxu2 %v15_v32  ;;  %96 = vmatmul.f32.vlgmr.msra.gmra.mxu3 %v15_v32 }
  0x22   :  { %69 = vmatpush.msra.mxu0 %v16_v30  ;;  %92 = vmatpush.msra.mxu1 %v17_v31 }
  0x23   :  { %70 = vmatmul.f32.vlgmr.msra.gmra.mxu0 %v14_v33  ;;  %93 = vmatmul.f32.vlgmr.msra.gmra.mxu1 %v14_v33 }
  0xa0   :  { %v71_v37 = vpop.f32.mrf.mxu0  ;;  %v94_v38 = vpop.f32.mrf.mxu1 }
  0xa1   :  { %v72_v39 = vadd.f32 %v71_v37, %v50_v35  ;;  %v95_v40 = vadd.f32 %v94_v38, %v51_v36 }
  0xa3   :  { %100 = vst [vmem:[%s280_s3] sm:$0xff] %v72_v39 }
  0xa4   :  { %v74_v41 = vpop.f32.mrf.mxu2  ;;  %101 = vst [vmem:[%s280_s3 + $0x8] sm:$0xff] %v95_v40  ;;  %v97_v42 = vpop.f32.mrf.mxu3 }
  0xa5   :  { %v75_v43 = vadd.f32 %v74_v41, %v50_v35  ;;  %v98_v44 = vadd.f32 %v97_v42, %v51_v36 }
  0xa7   :  { %102 = vst [vmem:[%s280_s3 + $0x10] sm:$0xff] %v75_v43 }
  0xa8   :  { %103 = vst [vmem:[%s280_s3 + $0x18] sm:$0xff] %v98_v44 }

</bundles_post_ra>
